<compile_context>
chip_gen: v5e
topology: v5e:2x2
jax: 0.10.0
libtpu: 0.0.40
codegen_flags: <defaults>
</compile_context>

<pallas_src>
import functools

import jax
import jax.numpy as jnp
from jax.experimental import pallas as pl
from jax.experimental.pallas import tpu as pltpu

BN_EPS = 1e-5
_VMEM_TILE_BUDGET = 32 * 1024 * 1024   # keep double-buffered tiles under this (v7x-safe)
_VMEM_LIMIT_CAP = 40 * 1024 * 1024     # scoped-VMEM cap (v7x has 64 MiB physical)


def _round_up(a, b):
    return (a + b - 1) // b * b


def _conv_stats_kernel(xe_ref, xo_ref, w1_ref, w2_ref,
                       sum1_ref, sq1_ref, sum2_ref, sq2_ref):
    """Phase 1: ReLU + both 1x1/stride-2 convs (W @ X matmuls) + streaming BN stats.

    Accumulators are resident across the inner ("arbitrary") grid axis and indexed by
    the leading core-parallel axis, so each TensorCore owns its own partial sums.
    """
    i = pl.program_id(1)

    @pl.when(i == 0)
    def _():
        sum1_ref[...] = jnp.zeros_like(sum1_ref)
        sq1_ref[...] = jnp.zeros_like(sq1_ref)
        sum2_ref[...] = jnp.zeros_like(sum2_ref)
        sq2_ref[...] = jnp.zeros_like(sq2_ref)

    xe = jnp.maximum(xe_ref[...], 0)                                    # ReLU (VPU)
    xo = jnp.maximum(xo_ref[...], 0)
    # (Co2, C_in) @ (C_in, tm) -> (Co2, tm), f32 accumulation on the MXU.
    y1 = jnp.dot(w1_ref[...], xe, preferred_element_type=jnp.float32)
    y2 = jnp.dot(w2_ref[...], xo, preferred_element_type=jnp.float32)
    # Per-channel sums over the lane (pixel) axis; zero-padded columns contribute 0.
    sum1_ref[...] += jnp.sum(y1, axis=1, keepdims=True)[None]
    sq1_ref[...] += jnp.sum(y1 * y1, axis=1, keepdims=True)[None]
    sum2_ref[...] += jnp.sum(y2, axis=1, keepdims=True)[None]
    sq2_ref[...] += jnp.sum(y2 * y2, axis=1, keepdims=True)[None]


def _bn_apply_kernel(xe_ref, xo_ref, w1_ref, w2_ref,
                     sc1_ref, sh1_ref, sc2_ref, sh2_ref, o_ref):
    """Phase 2: recompute y (ReLU + conv) and apply folded BN affine: y*scale + shift.

    The two conv branches land in the two static sublane halves of the lane-dense
    (C_out, tm) output block — the channel concat never materializes separately.
    """
    co2 = w1_ref.shape[0]
    xe = jnp.maximum(xe_ref[...], 0)
    xo = jnp.maximum(xo_ref[...], 0)
    y1 = jnp.dot(w1_ref[...], xe, preferred_element_type=jnp.float32)   # (Co2, tm)
    y2 = jnp.dot(w2_ref[...], xo, preferred_element_type=jnp.float32)
    o_ref[:co2, :] = (y1 * sc1_ref[...] + sh1_ref[...]).astype(o_ref.dtype)
    o_ref[co2:, :] = (y2 * sc2_ref[...] + sh2_ref[...]).astype(o_ref.dtype)


@functools.partial(jax.jit, static_argnames=("tile_rows",))
def factorized_reduce(x, w1, w2, gamma, beta, *, tile_rows=2048):
    N, C_in, H, W = x.shape
    assert H % 2 == 0 and W % 2 == 0, "even spatial dims required (implied by the channel cat)"
    Ho, Wo = H // 2, W // 2
    Co2 = w1.shape[0]
    C_out = 2 * Co2
    M = N * Ho * Wo
    itemsize = jnp.dtype(x.dtype).itemsize

    # Stride-2 spatial gathers for the two conv branches, laid out channels-first /
    # pixels-last so pixels map to lanes (lane-dense loads/stores for any C_in/C_out).
    # TODO(synk): fold this strided gather/relayout into the kernel's DMA (pl.ANY +
    # manual strided copies) or take a channels-major input from the surrounding model.
    xe = jnp.transpose(x[:, :, 0::2, 0::2], (1, 0, 2, 3)).reshape(C_in, M)
    xo = jnp.transpose(x[:, :, 1::2, 1::2], (1, 0, 2, 3)).reshape(C_in, M)

    # Conv weights as (Co2, C_in) matrices (mixed precision: cast to x.dtype for the MXU).
    w1m = w1.reshape(Co2, -1).astype(x.dtype)
    w2m = w2.reshape(Co2, -1).astype(x.dtype)

    # ---- Tiling: lane-aligned pixel tiles, sized from the actual VMEM footprint ------
    def _tile_bytes(rows):
        rows = _round_up(max(rows, 128), 128)
        # double-buffered xe + xo input tiles and (phase 2) output tile
        return 2 * (2 * C_in * rows + C_out * rows) * itemsize

    tr = max(int(tile_rows), 128)
    while tr > 256 and _tile_bytes(tr) > _VMEM_TILE_BUDGET:
        tr //= 2

    num_tiles = max(1, pl.cdiv(M, tr))
    n_cores = 2 if num_tiles >= 2 else 1          # leading core-parallel axis (v7x megacore)
    tiles_per_core = pl.cdiv(num_tiles, n_cores)
    total_tiles = n_cores * tiles_per_core
    tm = _round_up(pl.cdiv(M, total_tiles), 128)  # lanes must be a multiple of 128
    M_pad = tm * total_tiles
    if M_pad != M:
        pad = M_pad - M
        xe = jnp.pad(xe, ((0, 0), (0, pad)))      # zero columns -> 0 contribution to stats
        xo = jnp.pad(xo, ((0, 0), (0, pad)))

    w_bytes = 2 * (2 * Co2 * C_in * itemsize)
    vmem_limit = int(min(max(_tile_bytes(tm) + w_bytes + (4 << 20), 8 << 20), _VMEM_LIMIT_CAP))

    # ---- Phase 1: streaming per-channel sum / sum-of-squares (no y written to HBM) ----
    acc_shape = jax.ShapeDtypeStruct((n_cores, Co2, 1), jnp.float32)
    acc_spec = pl.BlockSpec((1, Co2, 1), lambda c, i: (c, 0, 0))
    in_tile_spec_2d = pl.BlockSpec((C_in, tm), lambda c, i: (0, c * tiles_per_core + i))
    w_spec_2d = pl.BlockSpec((Co2, C_in), lambda c, i: (0, 0))

    s1, q1, s2, q2 = pl.pallas_call(
        _conv_stats_kernel,
        grid=(n_cores, tiles_per_core),
        in_specs=[in_tile_spec_2d, in_tile_spec_2d, w_spec_2d, w_spec_2d],
        out_specs=(acc_spec, acc_spec, acc_spec, acc_spec),
        out_shape=(acc_shape, acc_shape, acc_shape, acc_shape),
        compiler_params=pltpu.CompilerParams(
            dimension_semantics=("parallel", "arbitrary"),
            vmem_limit_bytes=vmem_limit,
        ),
    )(xe, xo, w1m, w2m)

    # Tiny f32 finalize: combine per-core partials, batch mean, biased variance,
    # folded affine (y - mean) * rsqrt(var + eps) * gamma + beta == y * scale + shift.
    count = jnp.float32(M)                                            # true sample count
    ysum = jnp.concatenate([jnp.sum(s1, axis=0)[:, 0], jnp.sum(s2, axis=0)[:, 0]])
    ysumsq = jnp.concatenate([jnp.sum(q1, axis=0)[:, 0], jnp.sum(q2, axis=0)[:, 0]])
    mean = ysum / count
    var = jnp.maximum(ysumsq / count - mean * mean, 0.0)              # single-pass, f32
    inv = jax.lax.rsqrt(var + BN_EPS)
    scale = gamma.astype(jnp.float32) * inv
    shift = beta.astype(jnp.float32) - mean * scale
    sc1 = scale[:Co2].reshape(Co2, 1)
    sh1 = shift[:Co2].reshape(Co2, 1)
    sc2 = scale[Co2:].reshape(Co2, 1)
    sh2 = shift[Co2:].reshape(Co2, 1)

    # ---- Phase 2: recompute y and apply normalization, write final output directly ----
    in_tile_spec_1d = pl.BlockSpec((C_in, tm), lambda i: (0, i))
    w_spec_1d = pl.BlockSpec((Co2, C_in), lambda i: (0, 0))
    aff_spec = pl.BlockSpec((Co2, 1), lambda i: (0, 0))

    out_t = pl.pallas_call(
        _bn_apply_kernel,
        grid=(total_tiles,),
        in_specs=[in_tile_spec_1d, in_tile_spec_1d, w_spec_1d, w_spec_1d,
                  aff_spec, aff_spec, aff_spec, aff_spec],
        out_specs=pl.BlockSpec((C_out, tm), lambda i: (0, i)),
        out_shape=jax.ShapeDtypeStruct((C_out, M_pad), x.dtype),
        compiler_params=pltpu.CompilerParams(
            dimension_semantics=("parallel",),
            vmem_limit_bytes=vmem_limit,
        ),
    )(xe, xo, w1m, w2m, sc1, sh1, sc2, sh2)

    # Back to PyTorch's NCHW output layout (boundary glue).
    # TODO(synk): skip this relayout if the downstream consumer can take channels-major.
    out = out_t[:, :M].reshape(C_out, N, Ho, Wo)
    return jnp.transpose(out, (1, 0, 2, 3))


def _reference(x, w1, w2, gamma, beta):
    """Pure-JAX reference of the PyTorch module (training-mode BN forward)."""
    xr = jnp.maximum(x, 0.0)
    w1m = w1.reshape(w1.shape[0], -1)
    w2m = w2.reshape(w2.shape[0], -1)
    y1 = jnp.einsum("nchw,oc->nohw", xr[:, :, 0::2, 0::2], w1m)
    y2 = jnp.einsum("nchw,oc->nohw", xr[:, :, 1::2, 1::2], w2m)
    y = jnp.concatenate([y1, y2], axis=1)
    mean = jnp.mean(y, axis=(0, 2, 3), keepdims=True)
    var = jnp.mean((y - mean) ** 2, axis=(0, 2, 3), keepdims=True)
    g = gamma.reshape(1, -1, 1, 1)
    b = beta.reshape(1, -1, 1, 1)
    return (y - mean) * jax.lax.rsqrt(var + BN_EPS) * g + b


if __name__ == "__main__":
    key = jax.random.PRNGKey(0)
    kx, k1, k2 = jax.random.split(key, 3)

    N, C_in, H, W = 2, 4, 16, 16
    C_out = 8  # must be even

    x = jax.random.normal(kx, (N, C_in, H, W), dtype=jnp.float32)

    # Conv2d weight shape: (C_out//2, C_in, 1, 1); BatchNorm2d affine init gamma=1, beta=0.
    bound = (1.0 / C_in) ** 0.5
    w1 = jax.random.uniform(k1, (C_out // 2, C_in, 1, 1), jnp.float32, -bound, bound)
    w2 = jax.random.uniform(k2, (C_out // 2, C_in, 1, 1), jnp.float32, -bound, bound)
    gamma = jnp.ones((C_out,), jnp.float32)
    beta = jnp.zeros((C_out,), jnp.float32)

    out = factorized_reduce(x, w1, w2, gamma, beta)
    jax.block_until_ready(out)

    assert out.shape == (N, C_out, H // 2, W // 2)
    assert out.dtype == jnp.float32

    ref = _reference(x, w1, w2, gamma, beta)
    assert jnp.allclose(out, ref, atol=1e-3, rtol=1e-3), float(jnp.max(jnp.abs(out - ref)))

    print("KERNEL_OK")
</pallas_src>

<mosaic_0001>
module attributes {stable_mosaic.version = 11 : i64} {
  func.func @_conv_stats_kernel(%arg0: i32, %arg1: i32, %arg2: memref<4x128xf32, #tpu.memory_space<vmem>>, %arg3: memref<4x128xf32, #tpu.memory_space<vmem>>, %arg4: memref<4x4xf32, #tpu.memory_space<vmem>>, %arg5: memref<4x4xf32, #tpu.memory_space<vmem>>, %arg6: memref<1x4x1xf32, #tpu.memory_space<vmem>>, %arg7: memref<1x4x1xf32, #tpu.memory_space<vmem>>, %arg8: memref<1x4x1xf32, #tpu.memory_space<vmem>>, %arg9: memref<1x4x1xf32, #tpu.memory_space<vmem>>) attributes {dimension_semantics = [#tpu.dimension_semantics<parallel>, #tpu.dimension_semantics<arbitrary>], iteration_bounds = array<i64: 1, 1>, scalar_prefetch = 0 : i64, scratch_operands = 0 : i64, tpu.core_type = #tpu.core_type<tc>, window_params = [{transform_indices = @transform_0, window_bounds = array<i64: 4, 128>}, {transform_indices = @transform_1, window_bounds = array<i64: 4, 128>}, {pipeline_mode = #tpu.pipeline_mode<synchronous>, transform_indices = @transform_2, window_bounds = array<i64: 4, 4>}, {pipeline_mode = #tpu.pipeline_mode<synchronous>, transform_indices = @transform_3, window_bounds = array<i64: 4, 4>}, {transform_indices = @transform_4, window_bounds = array<i64: 1, 4, 1>}, {transform_indices = @transform_5, window_bounds = array<i64: 1, 4, 1>}, {transform_indices = @transform_6, window_bounds = array<i64: 1, 4, 1>}, {transform_indices = @transform_7, window_bounds = array<i64: 1, 4, 1>}]} {
    %c0_i32 = arith.constant 0 : i32
    %0 = arith.cmpi eq, %arg1, %c0_i32 : i32
    %1 = arith.extui %0 : i1 to i32
    %c0_i32_0 = arith.constant 0 : i32
    %2 = arith.cmpi ne, %1, %c0_i32_0 : i32
    scf.if %2 {
      %cst_39 = arith.constant 0.000000e+00 : f32
      %39 = vector.broadcast %cst_39 : f32 to vector<1x4x1xf32>
      %c0_40 = arith.constant 0 : index
      %c0_41 = arith.constant 0 : index
      %c0_42 = arith.constant 0 : index
      %40 = vector.load %arg6[%c0_40, %c0_41, %c0_42] : memref<1x4x1xf32, #tpu.memory_space<vmem>>, vector<1x4x1xf32>
      tpu.vector_store %arg6[%c0_40, %c0_41, %c0_42], %39 {strides = array<i32>} : memref<1x4x1xf32, #tpu.memory_space<vmem>>, vector<1x4x1xf32>,
      %cst_43 = arith.constant 0.000000e+00 : f32
      %41 = vector.broadcast %cst_43 : f32 to vector<1x4x1xf32>
      %c0_44 = arith.constant 0 : index
      %c0_45 = arith.constant 0 : index
      %c0_46 = arith.constant 0 : index
      %42 = vector.load %arg7[%c0_44, %c0_45, %c0_46] : memref<1x4x1xf32, #tpu.memory_space<vmem>>, vector<1x4x1xf32>
      tpu.vector_store %arg7[%c0_44, %c0_45, %c0_46], %41 {strides = array<i32>} : memref<1x4x1xf32, #tpu.memory_space<vmem>>, vector<1x4x1xf32>,
      %cst_47 = arith.constant 0.000000e+00 : f32
      %43 = vector.broadcast %cst_47 : f32 to vector<1x4x1xf32>
      %c0_48 = arith.constant 0 : index
      %c0_49 = arith.constant 0 : index
      %c0_50 = arith.constant 0 : index
      %44 = vector.load %arg8[%c0_48, %c0_49, %c0_50] : memref<1x4x1xf32, #tpu.memory_space<vmem>>, vector<1x4x1xf32>
      tpu.vector_store %arg8[%c0_48, %c0_49, %c0_50], %43 {strides = array<i32>} : memref<1x4x1xf32, #tpu.memory_space<vmem>>, vector<1x4x1xf32>,
      %cst_51 = arith.constant 0.000000e+00 : f32
      %45 = vector.broadcast %cst_51 : f32 to vector<1x4x1xf32>
      %c0_52 = arith.constant 0 : index
      %c0_53 = arith.constant 0 : index
      %c0_54 = arith.constant 0 : index
      %46 = vector.load %arg9[%c0_52, %c0_53, %c0_54] : memref<1x4x1xf32, #tpu.memory_space<vmem>>, vector<1x4x1xf32>
      tpu.vector_store %arg9[%c0_52, %c0_53, %c0_54], %45 {strides = array<i32>} : memref<1x4x1xf32, #tpu.memory_space<vmem>>, vector<1x4x1xf32>,
    } else {
    }
    %c0 = arith.constant 0 : index
    %c0_1 = arith.constant 0 : index
    %3 = vector.load %arg2[%c0, %c0_1] : memref<4x128xf32, #tpu.memory_space<vmem>>, vector<4x128xf32>
    %cst = arith.constant 0.000000e+00 : f32
    %4 = vector.broadcast %cst : f32 to vector<4x128xf32>
    %5 = arith.maximumf %3, %4 : vector<4x128xf32>
    %c0_2 = arith.constant 0 : index
    %c0_3 = arith.constant 0 : index
    %6 = vector.load %arg3[%c0_2, %c0_3] : memref<4x128xf32, #tpu.memory_space<vmem>>, vector<4x128xf32>
    %cst_4 = arith.constant 0.000000e+00 : f32
    %7 = vector.broadcast %cst_4 : f32 to vector<4x128xf32>
    %8 = arith.maximumf %6, %7 : vector<4x128xf32>
    %c0_5 = arith.constant 0 : index
    %c0_6 = arith.constant 0 : index
    %9 = vector.load %arg4[%c0_5, %c0_6] : memref<4x4xf32, #tpu.memory_space<vmem>>, vector<4x4xf32>
    %cst_7 = arith.constant dense<0.000000e+00> : vector<4x128xf32>
    %10 = tpu.matmul %9, %5, %cst_7 {dimension_numbers = #tpu.dot_dimension_numbers<[1], [0], [0], [1], [0, 0, 1, 1], [], []>} : vector<4x4xf32>, vector<4x128xf32>, vector<4x128xf32> -> vector<4x128xf32>
    %c0_8 = arith.constant 0 : index
    %c0_9 = arith.constant 0 : index
    %11 = vector.load %arg5[%c0_8, %c0_9] : memref<4x4xf32, #tpu.memory_space<vmem>>, vector<4x4xf32>
    %cst_10 = arith.constant dense<0.000000e+00> : vector<4x128xf32>
    %12 = tpu.matmul %11, %8, %cst_10 {dimension_numbers = #tpu.dot_dimension_numbers<[1], [0], [0], [1], [0, 0, 1, 1], [], []>} : vector<4x4xf32>, vector<4x128xf32>, vector<4x128xf32> -> vector<4x128xf32>
    %c0_11 = arith.constant 0 : index
    %c0_12 = arith.constant 0 : index
    %c0_13 = arith.constant 0 : index
    %13 = vector.load %arg6[%c0_11, %c0_12, %c0_13] : memref<1x4x1xf32, #tpu.memory_space<vmem>>, vector<1x4x1xf32>
    %cst_14 = arith.constant dense<0.000000e+00> : vector<4xf32>
    %14 = vector.multi_reduction <add>, %10, %cst_14 [1] : vector<4x128xf32> to vector<4xf32>
    %15 = vector.shape_cast %14 : vector<4xf32> to vector<4x1xf32>
    %16 = vector.shape_cast %15 : vector<4x1xf32> to vector<1x4x1xf32>
    %17 = arith.addf %13, %16 : vector<1x4x1xf32>
    %c0_15 = arith.constant 0 : index
    %c0_16 = arith.constant 0 : index
    %c0_17 = arith.constant 0 : index
    %18 = vector.load %arg6[%c0_15, %c0_16, %c0_17] : memref<1x4x1xf32, #tpu.memory_space<vmem>>, vector<1x4x1xf32>
    tpu.vector_store %arg6[%c0_15, %c0_16, %c0_17], %17 {strides = array<i32>} : memref<1x4x1xf32, #tpu.memory_space<vmem>>, vector<1x4x1xf32>,
    %c0_18 = arith.constant 0 : index
    %c0_19 = arith.constant 0 : index
    %c0_20 = arith.constant 0 : index
    %19 = vector.load %arg7[%c0_18, %c0_19, %c0_20] : memref<1x4x1xf32, #tpu.memory_space<vmem>>, vector<1x4x1xf32>
    %20 = arith.mulf %10, %10 : vector<4x128xf32>
    %cst_21 = arith.constant dense<0.000000e+00> : vector<4xf32>
    %21 = vector.multi_reduction <add>, %20, %cst_21 [1] : vector<4x128xf32> to vector<4xf32>
    %22 = vector.shape_cast %21 : vector<4xf32> to vector<4x1xf32>
    %23 = vector.shape_cast %22 : vector<4x1xf32> to vector<1x4x1xf32>
    %24 = arith.addf %19, %23 : vector<1x4x1xf32>
    %c0_22 = arith.constant 0 : index
    %c0_23 = arith.constant 0 : index
    %c0_24 = arith.constant 0 : index
    %25 = vector.load %arg7[%c0_22, %c0_23, %c0_24] : memref<1x4x1xf32, #tpu.memory_space<vmem>>, vector<1x4x1xf32>
    tpu.vector_store %arg7[%c0_22, %c0_23, %c0_24], %24 {strides = array<i32>} : memref<1x4x1xf32, #tpu.memory_space<vmem>>, vector<1x4x1xf32>,
    %c0_25 = arith.constant 0 : index
    %c0_26 = arith.constant 0 : index
    %c0_27 = arith.constant 0 : index
    %26 = vector.load %arg8[%c0_25, %c0_26, %c0_27] : memref<1x4x1xf32, #tpu.memory_space<vmem>>, vector<1x4x1xf32>
    %cst_28 = arith.constant dense<0.000000e+00> : vector<4xf32>
    %27 = vector.multi_reduction <add>, %12, %cst_28 [1] : vector<4x128xf32> to vector<4xf32>
    %28 = vector.shape_cast %27 : vector<4xf32> to vector<4x1xf32>
    %29 = vector.shape_cast %28 : vector<4x1xf32> to vector<1x4x1xf32>
    %30 = arith.addf %26, %29 : vector<1x4x1xf32>
    %c0_29 = arith.constant 0 : index
    %c0_30 = arith.constant 0 : index
    %c0_31 = arith.constant 0 : index
    %31 = vector.load %arg8[%c0_29, %c0_30, %c0_31] : memref<1x4x1xf32, #tpu.memory_space<vmem>>, vector<1x4x1xf32>
    tpu.vector_store %arg8[%c0_29, %c0_30, %c0_31], %30 {strides = array<i32>} : memref<1x4x1xf32, #tpu.memory_space<vmem>>, vector<1x4x1xf32>,
    %c0_32 = arith.constant 0 : index
    %c0_33 = arith.constant 0 : index
    %c0_34 = arith.constant 0 : index
    %32 = vector.load %arg9[%c0_32, %c0_33, %c0_34] : memref<1x4x1xf32, #tpu.memory_space<vmem>>, vector<1x4x1xf32>
    %33 = arith.mulf %12, %12 : vector<4x128xf32>
    %cst_35 = arith.constant dense<0.000000e+00> : vector<4xf32>
    %34 = vector.multi_reduction <add>, %33, %cst_35 [1] : vector<4x128xf32> to vector<4xf32>
    %35 = vector.shape_cast %34 : vector<4xf32> to vector<4x1xf32>
    %36 = vector.shape_cast %35 : vector<4x1xf32> to vector<1x4x1xf32>
    %37 = arith.addf %32, %36 : vector<1x4x1xf32>
    %c0_36 = arith.constant 0 : index
    %c0_37 = arith.constant 0 : index
    %c0_38 = arith.constant 0 : index
    %38 = vector.load %arg9[%c0_36, %c0_37, %c0_38] : memref<1x4x1xf32, #tpu.memory_space<vmem>>, vector<1x4x1xf32>
    tpu.vector_store %arg9[%c0_36, %c0_37, %c0_38], %37 {strides = array<i32>} : memref<1x4x1xf32, #tpu.memory_space<vmem>>, vector<1x4x1xf32>,
    return
  }
  func.func @transform_0(%arg0: i32, %arg1: i32) -> (i32, i32) {
    %c1_i32 = arith.constant 1 : i32
    %0 = arith.muli %arg0, %c1_i32 : i32
    %1 = arith.addi %0, %arg1 : i32
    %c0_i32 = arith.constant 0 : i32
    %c0_i32_0 = arith.constant 0 : i32
    return %c0_i32, %1 : i32, i32
  }
  func.func @transform_1(%arg0: i32, %arg1: i32) -> (i32, i32) {
    %c1_i32 = arith.constant 1 : i32
    %0 = arith.muli %arg0, %c1_i32 : i32
    %1 = arith.addi %0, %arg1 : i32
    %c0_i32 = arith.constant 0 : i32
    %c0_i32_0 = arith.constant 0 : i32
    return %c0_i32, %1 : i32, i32
  }
  func.func @transform_2(%arg0: i32, %arg1: i32) -> (i32, i32) {
    %c0_i32 = arith.constant 0 : i32
    %c0_i32_0 = arith.constant 0 : i32
    %c0_i32_1 = arith.constant 0 : i32
    return %c0_i32, %c0_i32_0 : i32, i32
  }
  func.func @transform_3(%arg0: i32, %arg1: i32) -> (i32, i32) {
    %c0_i32 = arith.constant 0 : i32
    %c0_i32_0 = arith.constant 0 : i32
    %c0_i32_1 = arith.constant 0 : i32
    return %c0_i32, %c0_i32_0 : i32, i32
  }
  func.func @transform_4(%arg0: i32, %arg1: i32) -> (i32, i32, i32) {
    %c0_i32 = arith.constant 0 : i32
    %c0_i32_0 = arith.constant 0 : i32
    %c0_i32_1 = arith.constant 0 : i32
    return %arg0, %c0_i32, %c0_i32_0 : i32, i32, i32
  }
  func.func @transform_5(%arg0: i32, %arg1: i32) -> (i32, i32, i32) {
    %c0_i32 = arith.constant 0 : i32
    %c0_i32_0 = arith.constant 0 : i32
    %c0_i32_1 = arith.constant 0 : i32
    return %arg0, %c0_i32, %c0_i32_0 : i32, i32, i32
  }
  func.func @transform_6(%arg0: i32, %arg1: i32) -> (i32, i32, i32) {
    %c0_i32 = arith.constant 0 : i32
    %c0_i32_0 = arith.constant 0 : i32
    %c0_i32_1 = arith.constant 0 : i32
    return %arg0, %c0_i32, %c0_i32_0 : i32, i32, i32
  }
  func.func @transform_7(%arg0: i32, %arg1: i32) -> (i32, i32, i32) {
    %c0_i32 = arith.constant 0 : i32
    %c0_i32_0 = arith.constant 0 : i32
    %c0_i32_1 = arith.constant 0 : i32
    return %arg0, %c0_i32, %c0_i32_0 : i32, i32, i32
  }
}

module attributes {stable_mosaic.version = 11 : i64} {
  func.func @_bn_apply_kernel(%arg0: i32, %arg1: memref<4x128xf32, #tpu.memory_space<vmem>>, %arg2: memref<4x128xf32, #tpu.memory_space<vmem>>, %arg3: memref<4x4xf32, #tpu.memory_space<vmem>>, %arg4: memref<4x4xf32, #tpu.memory_space<vmem>>, %arg5: memref<4x1xf32, #tpu.memory_space<vmem>>, %arg6: memref<4x1xf32, #tpu.memory_space<vmem>>, %arg7: memref<4x1xf32, #tpu.memory_space<vmem>>, %arg8: memref<4x1xf32, #tpu.memory_space<vmem>>, %arg9: memref<8x128xf32, #tpu.memory_space<vmem>>) attributes {dimension_semantics = [#tpu.dimension_semantics<parallel>], iteration_bounds = array<i64: 1>, scalar_prefetch = 0 : i64, scratch_operands = 0 : i64, tpu.core_type = #tpu.core_type<tc>, window_params = [{transform_indices = @transform_0, window_bounds = array<i64: 4, 128>}, {transform_indices = @transform_1, window_bounds = array<i64: 4, 128>}, {pipeline_mode = #tpu.pipeline_mode<synchronous>, transform_indices = @transform_2, window_bounds = array<i64: 4, 4>}, {pipeline_mode = #tpu.pipeline_mode<synchronous>, transform_indices = @transform_3, window_bounds = array<i64: 4, 4>}, {pipeline_mode = #tpu.pipeline_mode<synchronous>, transform_indices = @transform_4, window_bounds = array<i64: 4, 1>}, {pipeline_mode = #tpu.pipeline_mode<synchronous>, transform_indices = @transform_5, window_bounds = array<i64: 4, 1>}, {pipeline_mode = #tpu.pipeline_mode<synchronous>, transform_indices = @transform_6, window_bounds = array<i64: 4, 1>}, {pipeline_mode = #tpu.pipeline_mode<synchronous>, transform_indices = @transform_7, window_bounds = array<i64: 4, 1>}, {transform_indices = @transform_8, window_bounds = array<i64: 8, 128>}]} {
    %c0 = arith.constant 0 : index
    %c0_0 = arith.constant 0 : index
    %0 = vector.load %arg1[%c0, %c0_0] : memref<4x128xf32, #tpu.memory_space<vmem>>, vector<4x128xf32>
    %cst = arith.constant 0.000000e+00 : f32
    %1 = vector.broadcast %cst : f32 to vector<4x128xf32>
    %2 = arith.maximumf %0, %1 : vector<4x128xf32>
    %c0_1 = arith.constant 0 : index
    %c0_2 = arith.constant 0 : index
    %3 = vector.load %arg2[%c0_1, %c0_2] : memref<4x128xf32, #tpu.memory_space<vmem>>, vector<4x128xf32>
    %cst_3 = arith.constant 0.000000e+00 : f32
    %4 = vector.broadcast %cst_3 : f32 to vector<4x128xf32>
    %5 = arith.maximumf %3, %4 : vector<4x128xf32>
    %c0_4 = arith.constant 0 : index
    %c0_5 = arith.constant 0 : index
    %6 = vector.load %arg3[%c0_4, %c0_5] : memref<4x4xf32, #tpu.memory_space<vmem>>, vector<4x4xf32>
    %cst_6 = arith.constant dense<0.000000e+00> : vector<4x128xf32>
    %7 = tpu.matmul %6, %2, %cst_6 {dimension_numbers = #tpu.dot_dimension_numbers<[1], [0], [0], [1], [0, 0, 1, 1], [], []>} : vector<4x4xf32>, vector<4x128xf32>, vector<4x128xf32> -> vector<4x128xf32>
    %c0_7 = arith.constant 0 : index
    %c0_8 = arith.constant 0 : index
    %8 = vector.load %arg4[%c0_7, %c0_8] : memref<4x4xf32, #tpu.memory_space<vmem>>, vector<4x4xf32>
    %cst_9 = arith.constant dense<0.000000e+00> : vector<4x128xf32>
    %9 = tpu.matmul %8, %5, %cst_9 {dimension_numbers = #tpu.dot_dimension_numbers<[1], [0], [0], [1], [0, 0, 1, 1], [], []>} : vector<4x4xf32>, vector<4x128xf32>, vector<4x128xf32> -> vector<4x128xf32>
    %c0_10 = arith.constant 0 : index
    %c0_11 = arith.constant 0 : index
    %10 = vector.load %arg5[%c0_10, %c0_11] : memref<4x1xf32, #tpu.memory_space<vmem>>, vector<4x1xf32>
    %11 = vector.broadcast %10 : vector<4x1xf32> to vector<4x128xf32>
    %12 = arith.mulf %7, %11 : vector<4x128xf32>
    %c0_12 = arith.constant 0 : index
    %c0_13 = arith.constant 0 : index
    %13 = vector.load %arg6[%c0_12, %c0_13] : memref<4x1xf32, #tpu.memory_space<vmem>>, vector<4x1xf32>
    %14 = vector.broadcast %13 : vector<4x1xf32> to vector<4x128xf32>
    %15 = arith.addf %12, %14 : vector<4x128xf32>
    %c0_14 = arith.constant 0 : index
    %c0_15 = arith.constant 0 : index
    %16 = vector.load %arg9[%c0_14, %c0_15] : memref<8x128xf32, #tpu.memory_space<vmem>>, vector<4x128xf32>
    tpu.vector_store %arg9[%c0_14, %c0_15], %15 {strides = array<i32>} : memref<8x128xf32, #tpu.memory_space<vmem>>, vector<4x128xf32>,
    %c0_16 = arith.constant 0 : index
    %c0_17 = arith.constant 0 : index
    %17 = vector.load %arg7[%c0_16, %c0_17] : memref<4x1xf32, #tpu.memory_space<vmem>>, vector<4x1xf32>
    %18 = vector.broadcast %17 : vector<4x1xf32> to vector<4x128xf32>
    %19 = arith.mulf %9, %18 : vector<4x128xf32>
    %c0_18 = arith.constant 0 : index
    %c0_19 = arith.constant 0 : index
    %20 = vector.load %arg8[%c0_18, %c0_19] : memref<4x1xf32, #tpu.memory_space<vmem>>, vector<4x1xf32>
    %21 = vector.broadcast %20 : vector<4x1xf32> to vector<4x128xf32>
    %22 = arith.addf %19, %21 : vector<4x128xf32>
    %c4 = arith.constant 4 : index
    %c0_20 = arith.constant 0 : index
    %23 = vector.load %arg9[%c4, %c0_20] : memref<8x128xf32, #tpu.memory_space<vmem>>, vector<4x128xf32>
    tpu.vector_store %arg9[%c4, %c0_20], %22 {strides = array<i32>} : memref<8x128xf32, #tpu.memory_space<vmem>>, vector<4x128xf32>,
    return
  }
  func.func @transform_0(%arg0: i32) -> (i32, i32) {
    %c0_i32 = arith.constant 0 : i32
    %c0_i32_0 = arith.constant 0 : i32
    return %c0_i32, %arg0 : i32, i32
  }
  func.func @transform_1(%arg0: i32) -> (i32, i32) {
    %c0_i32 = arith.constant 0 : i32
    %c0_i32_0 = arith.constant 0 : i32
    return %c0_i32, %arg0 : i32, i32
  }
  func.func @transform_2(%arg0: i32) -> (i32, i32) {
    %c0_i32 = arith.constant 0 : i32
    %c0_i32_0 = arith.constant 0 : i32
    %c0_i32_1 = arith.constant 0 : i32
    return %c0_i32, %c0_i32_0 : i32, i32
  }
  func.func @transform_3(%arg0: i32) -> (i32, i32) {
    %c0_i32 = arith.constant 0 : i32
    %c0_i32_0 = arith.constant 0 : i32
    %c0_i32_1 = arith.constant 0 : i32
    return %c0_i32, %c0_i32_0 : i32, i32
  }
  func.func @transform_4(%arg0: i32) -> (i32, i32) {
    %c0_i32 = arith.constant 0 : i32
    %c0_i32_0 = arith.constant 0 : i32
    %c0_i32_1 = arith.constant 0 : i32
    return %c0_i32, %c0_i32_0 : i32, i32
  }
  func.func @transform_5(%arg0: i32) -> (i32, i32) {
    %c0_i32 = arith.constant 0 : i32
    %c0_i32_0 = arith.constant 0 : i32
    %c0_i32_1 = arith.constant 0 : i32
    return %c0_i32, %c0_i32_0 : i32, i32
  }
  func.func @transform_6(%arg0: i32) -> (i32, i32) {
    %c0_i32 = arith.constant 0 : i32
    %c0_i32_0 = arith.constant 0 : i32
    %c0_i32_1 = arith.constant 0 : i32
    return %c0_i32, %c0_i32_0 : i32, i32
  }
  func.func @transform_7(%arg0: i32) -> (i32, i32) {
    %c0_i32 = arith.constant 0 : i32
    %c0_i32_0 = arith.constant 0 : i32
    %c0_i32_1 = arith.constant 0 : i32
    return %c0_i32, %c0_i32_0 : i32, i32
  }
  func.func @transform_8(%arg0: i32) -> (i32, i32) {
    %c0_i32 = arith.constant 0 : i32
    %c0_i32_0 = arith.constant 0 : i32
    return %c0_i32, %arg0 : i32, i32
  }
}

</mosaic_0001>

<bundles_post_ra>
// kernel: factorized_reduce.3
= control target key start
LH: loop header
LB: loop body
LE: loop exit
PB: predicated region body
PF: predicated region fallthrough
CT: control target
= control target key end

     0   :  { %vm38_vm0 = vcmask 1043456   ;;  %v130_v0 = vmov 0   ;;  %vm34_vm1 = vcmask 31744   ;;  %s208_s5 = inlined_call_operand.vmem [shape: f32[4,1], index: 5, kind: input, shape index: {}]   ;;  %s209_s4 = inlined_call_operand.vmem [shape: f32[4,1], index: 4, kind: input, shape index: {}]   ;;  %s210_s0 = inlined_call_operand.vmem [shape: f32[4,128], index: 0, kind: input, shape index: {}]   ;;  %s211_s1 = inlined_call_operand.vmem [shape: f32[4,128], index: 1, kind: input, shape index: {}]   ;;  %s212_s2 = inlined_call_operand.vmem [shape: f32[4,4], index: 2, kind: input, shape index: {}]   ;;  %s213_s3 = inlined_call_operand.vmem [shape: f32[4,4], index: 3, kind: input, shape index: {}]   ;;  %s214_s7 = inlined_call_operand.vmem [shape: f32[4,1], index: 7, kind: input, shape index: {}]   ;;  %s215_s6 = inlined_call_operand.vmem [shape: f32[4,1], index: 6, kind: input, shape index: {}]   ;;  %s216_s8 = inlined_call_operand.vmem [shape: f32[8,128], index: 8, kind: output, shape index: {}]  }
   0x1   :  { %129 = vset.pattern.permute.xlu1 %v130_v0  ;;  %128 = vset.pattern.permute.xlu0 %v130_v0  ;;  %v96_v1 = vld [vmem:[%s208_s5] sm:$0xf] }
   0x2   :  { %v89_v2 = vld [vmem:[%s209_s4] sm:$0xf]  ;;  %99 = vperm.xlu1 %129, %v96_v1  }
   0x3   :  { %v29_v3 = vld [vmem:[%s210_s0] sm:$0xf]  ;;  %92 = vperm.xlu0 %128, %v89_v2  }
   0x4   :  { %v30_v4 = vmax.f32 %v29_v3, 0.0  ;;  %v31_v5 = vld [vmem:[%s211_s1] sm:$0xf] }
   0x5   :  { %v33_v6 = vld [vmem:[%s212_s2] sm:$0xf]  ;;  %v32_v7 = vmax.f32 %v31_v5, 0.0 }
   0x6   :  { %v62_v8 = vld [vmem:[%s213_s3] sm:$0xf]  ;;  %123 = vmatpush.msk.msra.mxu0 %vm38_vm0, %v30_v4 }
   0x7   :  { %125 = vmatpush.msk.msra.mxu1 %vm38_vm0, %v32_v7  ;;  %124 = vmatmul.msk.f32.vlgmr.msra.gmra.mxu0 %vm34_vm1, %v33_v6  ;;  %v111_v9 = vld [vmem:[%s214_s7] sm:$0xf] }
   0x8   :  { %126 = vmatmul.msk.f32.vlgmr.msra.gmra.mxu1 %vm34_vm1, %v62_v8  ;;  %v104_v10 = vld [vmem:[%s215_s6] sm:$0xf] }
   0xa   :  { %114 = vperm.xlu1 %129, %v111_v9  }
   0xb   :  { %107 = vperm.xlu0 %128, %v104_v10  }
  0x74   :  { %v100_v12 = vpop.permute.xlu1 %99 }
  0x75   :  { %v93_v11 = vpop.permute.xlu0 %92 }
  0x7c   :  { %v115_v18 = vpop.permute.xlu1 %114 }
  0x7d   :  { %v108_v14 = vpop.permute.xlu0 %107 }
  0x84   :  { %v59_v13 = vpop.f32.mrf.mxu0 }
  0x85   :  { %v95_v15 = vmul.f32 %v93_v11, %v59_v13  ;;  %v86_v16 = vpop.f32.mrf.mxu1 }
  0x86   :  { %v110_v17 = vmul.f32 %v108_v14, %v86_v16 }
  0x87   :  { %v102_v19 = vadd.f32 %v100_v12, %v95_v15 }
  0x88   :  { %v117_v20 = vadd.f32 %v115_v18, %v110_v17 }
  0x89   :  { %103 = vst [vmem:[%s216_s8] sm:$0xf] %v102_v19 }
  0x8a   :  { %118 = vst [vmem:[%s216_s8 + $0x4] sm:$0xf] %v117_v20 }

// kernel: factorized_reduce.2
= control target key start
LH: loop header
LB: loop body
LE: loop exit
PB: predicated region body
PF: predicated region fallthrough
CT: control target
= control target key end

     0   :  { %vm73_vm0 = vcmask 1043456   ;;  %vm69_vm1 = vcmask 31744   ;;  %vm59_vm2 = vcmask 3072   ;;  %v184_v6 = vmov 0.0   ;;  %s287_s0 = inlined_call_operand.vmem [shape: f32[4,128], index: 0, kind: input, shape index: {}]   ;;  %s288_s1 = inlined_call_operand.vmem [shape: f32[4,128], index: 1, kind: input, shape index: {}]   ;;  %s289_s2 = inlined_call_operand.vmem [shape: f32[4,4], index: 2, kind: input, shape index: {}]   ;;  %s290_s3 = inlined_call_operand.vmem [shape: f32[4,4], index: 3, kind: input, shape index: {}]   ;;  %s291_s6 = inlined_call_operand.vmem [shape: f32[1,4,1], index: 6, kind: output, shape index: {2}]   ;;  %s292_s4 = inlined_call_operand.vmem [shape: f32[1,4,1], index: 4, kind: output, shape index: {0}]   ;;  %s293_s7 = inlined_call_operand.vmem [shape: f32[1,4,1], index: 7, kind: output, shape index: {3}]   ;;  %s294_s5 = inlined_call_operand.vmem [shape: f32[1,4,1], index: 5, kind: output, shape index: {1}]  }
   0x1   :  { %v64_v0 = vld [vmem:[%s287_s0] sm:$0xf]  ;;  %62 = vst.msk [vmem:[%s291_s6] sm:$0xf] %vm59_vm2, %v184_v6 }
   0x2   :  { %v66_v1 = vld [vmem:[%s288_s1] sm:$0xf]  ;;  %v65_v2 = vmax.f32 %v64_v0, 0.0  ;;  %60 = vst.msk [vmem:[%s292_s4] sm:$0xf] %vm59_vm2, %v184_v6 }
   0x3   :  { %v67_v3 = vmax.f32 %v66_v1, 0.0  ;;  %v68_v4 = vld [vmem:[%s289_s2] sm:$0xf]  ;;  %63 = vst.msk [vmem:[%s293_s7] sm:$0xf] %vm59_vm2, %v184_v6 }
   0x4   :  { %v97_v5 = vld [vmem:[%s290_s3] sm:$0xf]  ;;  %179 = vmatpush.msk.msra.mxu0 %vm73_vm0, %v65_v2  ;;  %61 = vst.msk [vmem:[%s294_s5] sm:$0xf] %vm59_vm2, %v184_v6 }
   0x5   :  { %181 = vmatpush.msk.msra.mxu1 %vm73_vm0, %v67_v3  ;;  %180 = vmatmul.msk.f32.vlgmr.msra.gmra.mxu0 %vm69_vm1, %v68_v4 }
   0x6   :  { %182 = vmatmul.msk.f32.vlgmr.msra.gmra.mxu1 %vm69_vm1, %v97_v5 }
   0x8   :  { %v138_v15 = vld [vmem:[%s291_s6] sm:$0xf] }
   0x9   :  { %v124_v16 = vld [vmem:[%s292_s4] sm:$0xf] }
   0xa   :  { %v144_v21 = vld [vmem:[%s293_s7] sm:$0xf] }
   0xb   :  { %v131_v22 = vld [vmem:[%s294_s5] sm:$0xf] }
  0x82   :  { %v94_v7 = vpop.f32.mrf.mxu0 }
  0x83   :  { %v121_v8 = vpop.f32.mrf.mxu1  ;;  %v125_v10 = vsel %vm73_vm0, %v94_v7, 0.0  ;;  %v132_v11 = vmul.f32 %v94_v7, %v94_v7 }
  0x84   :  { %v139_v9 = vsel %vm73_vm0, %v121_v8, 0.0  ;;  %126 = vadd.xlane.f32.xlu0 %v125_v10  ;;  %v145_v12 = vmul.f32 %v121_v8, %v121_v8 }
  0x85   :  { %140 = vadd.xlane.f32.xlu1 %v139_v9  ;;  %v133_v14 = vsel %vm73_vm0, %v132_v11, 0.0 }
  0x86   :  { %v146_v13 = vsel %vm73_vm0, %v145_v12, 0.0 }
  0x8c   :  { %134 = vadd.xlane.f32.xlu0 %v133_v14 }
  0x8d   :  { %147 = vadd.xlane.f32.xlu1 %v146_v13 }
  0xf7   :  { %v127_v18 = vpop.xlane.xlu0 %126 }
  0xf8   :  { %v141_v17 = vpop.xlane.xlu1 %140  ;;  %v128_v20 = vadd.f32 %v127_v18, %v124_v16 }
  0xf9   :  { %v142_v19 = vadd.f32 %v141_v17, %v138_v15 }
  0xfa   :  { %130 = vst.msk [vmem:[%s292_s4] sm:$0xf] %vm59_vm2, %v128_v20 }
  0xfb   :  { %143 = vst.msk [vmem:[%s291_s6] sm:$0xf] %vm59_vm2, %v142_v19 }
  0xff   :  { %v135_v24 = vpop.xlane.xlu0 %134 }
 0x100   :  { %v148_v23 = vpop.xlane.xlu1 %147  ;;  %v136_v26 = vadd.f32 %v135_v24, %v131_v22 }
 0x101   :  { %v149_v25 = vadd.f32 %v148_v23, %v144_v21 }
 0x102   :  { %137 = vst.msk [vmem:[%s294_s5] sm:$0xf] %vm59_vm2, %v136_v26 }
 0x103   :  { %150 = vst.msk [vmem:[%s293_s7] sm:$0xf] %vm59_vm2, %v149_v25 }

</bundles_post_ra>
